<compile_context>
chip_gen: v7x
topology: tpu7x:2x2x1
jax: 0.10.0
libtpu: 0.0.40
codegen_flags: <defaults>
</compile_context>

<pallas_src>
import functools
import math

import jax
import jax.numpy as jnp
from jax.experimental import pallas as pl
from jax.experimental.pallas import tpu as pltpu


def _critic_kernel(n_nodes,
                   inst_ref,                              # (B*N, S)
                   ws_ref, bs_ref,                        # project_s
                   wa_ref, ba_ref, va_ref,                # w_a + v_a (row)
                   wc1_ref, wc2_ref, bc_ref, vc_ref,      # w_c split + v_c (row)
                   w1_ref, b1_ref,                        # linear_1
                   w2_ref, b2_ref,                        # linear_2 (row)
                   out_ref):
    f32 = jnp.float32
    BN = inst_ref.shape[0]
    N = n_nodes
    B = BN // N
    E = ws_ref.shape[1]

    x = inst_ref[...]                                                     # (BN, S)

    # Encoder matmuls, batched over all B*N node rows (shared weights).
    proj = jnp.dot(x, ws_ref[...], preferred_element_type=f32) + bs_ref[...]      # (BN, E)
    ha = jnp.tanh(jnp.dot(proj, wa_ref[...], preferred_element_type=f32)
                  + ba_ref[...])                                                  # (BN, E)

    # u_t = <v_a, ha_row>: VPU multiply + XLU lane reduce (no 1-wide matmul).
    u = jnp.sum(ha * va_ref[...], axis=-1, keepdims=True)                          # (BN, 1)

    # First softmax: per-batch over the N-node segment (sublane reductions).
    u3 = u.reshape(B, N, 1)
    m = jnp.max(u3, axis=1, keepdims=True)
    e = jnp.exp(u3 - m)
    a3 = e * pl.reciprocal(jnp.sum(e, axis=1, keepdims=True), approx=True)         # (B, N, 1)

    proj3 = proj.reshape(B, N, E)
    c = (a3 * proj3).reshape(BN, E)                                                # (BN, E)

    # w_c([proj, c]) without lane-axis concat: split weight, two matmuls, one add.
    hc = jnp.tanh(jnp.dot(proj, wc1_ref[...], preferred_element_type=f32)
                  + jnp.dot(c, wc2_ref[...], preferred_element_type=f32)
                  + bc_ref[...])                                                   # (BN, E)
    u2 = jnp.sum(hc * vc_ref[...], axis=-1, keepdims=True)                         # (BN, 1)

    # Second softmax + weighted node sum, normalization folded into one recip.
    u2_3 = u2.reshape(B, N, 1)
    m2 = jnp.max(u2_3, axis=1, keepdims=True)
    e2 = jnp.exp(u2_3 - m2)                                                        # (B, N, 1)
    numer = jnp.sum(e2 * proj3, axis=1)                                            # (B, E)
    denom = jnp.sum(e2, axis=1)                                                    # (B, 1)
    h = numer * pl.reciprocal(denom, approx=True)                                  # (B, E)

    # MLP head, batched over B; final layer is a VPU reduce against w2 row.
    o1 = jnp.maximum(jnp.dot(h, w1_ref[...], preferred_element_type=f32)
                     + b1_ref[...], 0.0)                                           # (B, E)
    v = jnp.sum(o1 * w2_ref[...], axis=-1, keepdims=True) + b2_ref[...]            # (B, 1)

    out_ref[...] = v                                                               # single store


def critic_forward(instance, p, n_nodes):
    B, N, S = instance.shape
    assert N == n_nodes
    E = p["wa_t"].shape[0]

    # Wrapper-side (free) weight massaging: split w_c, turn column vectors into rows.
    x2d = instance.reshape(B * N, S)
    wc1_t = p["wc_t"][:E, :]
    wc2_t = p["wc_t"][E:, :]
    va_row = p["va"].reshape(1, E)
    vc_row = p["vc"].reshape(1, E)
    w2_row = p["w2_t"].reshape(1, E)

    args = (x2d,
            p["ws_t"], p["bs"],
            p["wa_t"], p["ba"], va_row,
            wc1_t, wc2_t, p["bc"], vc_row,
            p["w1_t"], p["b1"],
            w2_row, p["b2"])

    out = pl.pallas_call(
        functools.partial(_critic_kernel, N),
        out_shape=jax.ShapeDtypeStruct((B, 1), jnp.float32),
        in_specs=[pl.BlockSpec(memory_space=pltpu.MemorySpace.VMEM)] * len(args),
        out_specs=pl.BlockSpec(memory_space=pltpu.MemorySpace.VMEM),
    )(*args)
    return out[:, 0]                    # matches .squeeze(1) -> (B,)


# ---------------- parameter init (deterministic, mirrors module shapes) ----------------

def _xavier(key, fan_in, fan_out, shape):
    limit = math.sqrt(6.0 / (fan_in + fan_out))
    return jax.random.uniform(key, shape, jnp.float32, -limit, limit)


def _bias(key, fan_in, shape):
    bound = 1.0 / math.sqrt(fan_in)
    return jax.random.uniform(key, shape, jnp.float32, -bound, bound)


def init_critic_params(key, dim_s, dim_embed):
    E = dim_embed
    ks = jax.random.split(key, 12)
    # Conv1d(dim_s, E, 1) -> weight (E, dim_s); stored transposed (dim_s, E)
    ws = _xavier(ks[0], dim_s, E, (E, dim_s))
    wa = _xavier(ks[1], E, E, (E, E))
    wc = _xavier(ks[2], 2 * E, E, (E, 2 * E))
    w1 = _xavier(ks[3], E, E, (E, E))
    w2 = _xavier(ks[4], E, 1, (1, E))
    return {
        "ws_t": ws.T, "bs": _bias(ks[5], dim_s, (1, E)),
        "wa_t": wa.T, "ba": _bias(ks[6], E, (1, E)),
        "va": jax.random.normal(ks[7], (E, 1), jnp.float32),
        "wc_t": wc.T, "bc": _bias(ks[8], 2 * E, (1, E)),
        "vc": jax.random.normal(ks[9], (E, 1), jnp.float32),
        "w1_t": w1.T, "b1": _bias(ks[10], E, (1, E)),
        "w2_t": w2.T, "b2": _bias(ks[11], E, (1, 1)),
    }


# ---------------- pure-JAX reference for verification ----------------

def critic_reference(instance, p):
    proj = instance @ p["ws_t"] + p["bs"]                       # (B, N, E)
    ha = jnp.tanh(proj @ p["wa_t"] + p["ba"])
    u = jnp.einsum("bne,ei->bn", ha, p["va"])                   # (B, N)
    a = jax.nn.softmax(u, axis=1)[..., None]                    # (B, N, 1)
    c = a * proj
    hidden = jnp.concatenate([proj, c], axis=2)                 # (B, N, 2E)
    hc = jnp.tanh(hidden @ p["wc_t"] + p["bc"])
    u2 = jnp.einsum("bne,ei->bn", hc, p["vc"])
    prob = jax.nn.softmax(u2, axis=1)
    h = jnp.einsum("bn,bne->be", prob, proj)                    # (B, E)
    o1 = jax.nn.relu(h @ p["w1_t"] + p["b1"])
    v = o1 @ p["w2_t"] + p["b2"]
    return v[:, 0]


if __name__ == "__main__":
    B, N, DIM_S, DIM_EMBED = 2, 8, 4, 32

    key = jax.random.PRNGKey(0)
    k_inst, k_state, k_params = jax.random.split(key, 3)

    # o = (state, instance); forward only uses o[1]
    instance = jax.random.normal(k_inst, (B, N, DIM_S), jnp.float32)
    state = jax.random.normal(k_state, (B, N, DIM_S), jnp.float32)  # unused, API parity
    o = (state, instance)

    params = init_critic_params(k_params, DIM_S, DIM_EMBED)

    v = critic_forward(o[1], params, N)
    v = jax.block_until_ready(v)

    v_ref = critic_reference(o[1], params)
    assert v.shape == (B,), v.shape
    # approx reciprocal (EUP) in the softmax denominators -> slightly looser tolerance
    assert jnp.allclose(v, v_ref, atol=2e-3, rtol=2e-3), (v, v_ref)

    print("KERNEL_OK")
</pallas_src>

<mosaic_0001>
module attributes {stable_mosaic.version = 11 : i64} {
  func.func @_critic_kernel(%arg0: memref<16x4xf32, #tpu.memory_space<vmem>>, %arg1: memref<4x32xf32, #tpu.memory_space<vmem>>, %arg2: memref<1x32xf32, #tpu.memory_space<vmem>>, %arg3: memref<32x32xf32, #tpu.memory_space<vmem>>, %arg4: memref<1x32xf32, #tpu.memory_space<vmem>>, %arg5: memref<1x32xf32, #tpu.memory_space<vmem>>, %arg6: memref<32x32xf32, #tpu.memory_space<vmem>>, %arg7: memref<32x32xf32, #tpu.memory_space<vmem>>, %arg8: memref<1x32xf32, #tpu.memory_space<vmem>>, %arg9: memref<1x32xf32, #tpu.memory_space<vmem>>, %arg10: memref<32x32xf32, #tpu.memory_space<vmem>>, %arg11: memref<1x32xf32, #tpu.memory_space<vmem>>, %arg12: memref<1x32xf32, #tpu.memory_space<vmem>>, %arg13: memref<1x1xf32, #tpu.memory_space<vmem>>, %arg14: memref<2x1xf32, #tpu.memory_space<vmem>>) attributes {dimension_semantics = [], scalar_prefetch = 0 : i64, scratch_operands = 0 : i64, tpu.core_type = #tpu.core_type<tc>} {
    %c0 = arith.constant 0 : index
    %c0_0 = arith.constant 0 : index
    %0 = vector.load %arg0[%c0, %c0_0] : memref<16x4xf32, #tpu.memory_space<vmem>>, vector<16x4xf32>
    %c0_1 = arith.constant 0 : index
    %c0_2 = arith.constant 0 : index
    %1 = vector.load %arg1[%c0_1, %c0_2] : memref<4x32xf32, #tpu.memory_space<vmem>>, vector<4x32xf32>
    %cst = arith.constant dense<0.000000e+00> : vector<16x32xf32>
    %2 = tpu.matmul %0, %1, %cst {dimension_numbers = #tpu.dot_dimension_numbers<[1], [0], [0], [1], [0, 0, 1, 1], [], []>} : vector<16x4xf32>, vector<4x32xf32>, vector<16x32xf32> -> vector<16x32xf32>
    %c0_3 = arith.constant 0 : index
    %c0_4 = arith.constant 0 : index
    %3 = vector.load %arg2[%c0_3, %c0_4] : memref<1x32xf32, #tpu.memory_space<vmem>>, vector<1x32xf32>
    %4 = vector.broadcast %3 : vector<1x32xf32> to vector<16x32xf32>
    %5 = arith.addf %2, %4 : vector<16x32xf32>
    %c0_5 = arith.constant 0 : index
    %c0_6 = arith.constant 0 : index
    %6 = vector.load %arg3[%c0_5, %c0_6] : memref<32x32xf32, #tpu.memory_space<vmem>>, vector<32x32xf32>
    %cst_7 = arith.constant dense<0.000000e+00> : vector<16x32xf32>
    %7 = tpu.matmul %5, %6, %cst_7 {dimension_numbers = #tpu.dot_dimension_numbers<[1], [0], [0], [1], [0, 0, 1, 1], [], []>} : vector<16x32xf32>, vector<32x32xf32>, vector<16x32xf32> -> vector<16x32xf32>
    %c0_8 = arith.constant 0 : index
    %c0_9 = arith.constant 0 : index
    %8 = vector.load %arg4[%c0_8, %c0_9] : memref<1x32xf32, #tpu.memory_space<vmem>>, vector<1x32xf32>
    %9 = vector.broadcast %8 : vector<1x32xf32> to vector<16x32xf32>
    %10 = arith.addf %7, %9 : vector<16x32xf32>
    %11 = math.tanh %10 : vector<16x32xf32>
    %c0_10 = arith.constant 0 : index
    %c0_11 = arith.constant 0 : index
    %12 = vector.load %arg5[%c0_10, %c0_11] : memref<1x32xf32, #tpu.memory_space<vmem>>, vector<1x32xf32>
    %13 = vector.broadcast %12 : vector<1x32xf32> to vector<16x32xf32>
    %14 = arith.mulf %11, %13 : vector<16x32xf32>
    %cst_12 = arith.constant dense<0.000000e+00> : vector<16xf32>
    %15 = vector.multi_reduction <add>, %14, %cst_12 [1] : vector<16x32xf32> to vector<16xf32>
    %16 = vector.shape_cast %15 : vector<16xf32> to vector<16x1xf32>
    %17 = vector.shape_cast %16 : vector<16x1xf32> to vector<2x8x1xf32>
    %cst_13 = arith.constant dense<0xFF800000> : vector<2x1xf32>
    %18 = vector.multi_reduction <maximumf>, %17, %cst_13 [1] : vector<2x8x1xf32> to vector<2x1xf32>
    %19 = vector.shape_cast %18 : vector<2x1xf32> to vector<2x1x1xf32>
    %20 = vector.broadcast %19 : vector<2x1x1xf32> to vector<2x8x1xf32>
    %21 = arith.subf %17, %20 : vector<2x8x1xf32>
    %22 = math.exp %21 : vector<2x8x1xf32>
    %cst_14 = arith.constant dense<0.000000e+00> : vector<2x1xf32>
    %23 = vector.multi_reduction <add>, %22, %cst_14 [1] : vector<2x8x1xf32> to vector<2x1xf32>
    %24 = vector.shape_cast %23 : vector<2x1xf32> to vector<2x1x1xf32>
    %25 = tpu.reciprocal %24 {approx = true} : vector<2x1x1xf32> -> vector<2x1x1xf32>
    %26 = vector.broadcast %25 : vector<2x1x1xf32> to vector<2x8x1xf32>
    %27 = arith.mulf %22, %26 : vector<2x8x1xf32>
    %28 = vector.shape_cast %5 : vector<16x32xf32> to vector<2x8x32xf32>
    %29 = vector.broadcast %27 : vector<2x8x1xf32> to vector<2x8x32xf32>
    %30 = arith.mulf %29, %28 : vector<2x8x32xf32>
    %31 = vector.shape_cast %30 : vector<2x8x32xf32> to vector<16x32xf32>
    %c0_15 = arith.constant 0 : index
    %c0_16 = arith.constant 0 : index
    %32 = vector.load %arg6[%c0_15, %c0_16] : memref<32x32xf32, #tpu.memory_space<vmem>>, vector<32x32xf32>
    %cst_17 = arith.constant dense<0.000000e+00> : vector<16x32xf32>
    %33 = tpu.matmul %5, %32, %cst_17 {dimension_numbers = #tpu.dot_dimension_numbers<[1], [0], [0], [1], [0, 0, 1, 1], [], []>} : vector<16x32xf32>, vector<32x32xf32>, vector<16x32xf32> -> vector<16x32xf32>
    %c0_18 = arith.constant 0 : index
    %c0_19 = arith.constant 0 : index
    %34 = vector.load %arg7[%c0_18, %c0_19] : memref<32x32xf32, #tpu.memory_space<vmem>>, vector<32x32xf32>
    %cst_20 = arith.constant dense<0.000000e+00> : vector<16x32xf32>
    %35 = tpu.matmul %31, %34, %cst_20 {dimension_numbers = #tpu.dot_dimension_numbers<[1], [0], [0], [1], [0, 0, 1, 1], [], []>} : vector<16x32xf32>, vector<32x32xf32>, vector<16x32xf32> -> vector<16x32xf32>
    %36 = arith.addf %33, %35 : vector<16x32xf32>
    %c0_21 = arith.constant 0 : index
    %c0_22 = arith.constant 0 : index
    %37 = vector.load %arg8[%c0_21, %c0_22] : memref<1x32xf32, #tpu.memory_space<vmem>>, vector<1x32xf32>
    %38 = vector.broadcast %37 : vector<1x32xf32> to vector<16x32xf32>
    %39 = arith.addf %36, %38 : vector<16x32xf32>
    %40 = math.tanh %39 : vector<16x32xf32>
    %c0_23 = arith.constant 0 : index
    %c0_24 = arith.constant 0 : index
    %41 = vector.load %arg9[%c0_23, %c0_24] : memref<1x32xf32, #tpu.memory_space<vmem>>, vector<1x32xf32>
    %42 = vector.broadcast %41 : vector<1x32xf32> to vector<16x32xf32>
    %43 = arith.mulf %40, %42 : vector<16x32xf32>
    %cst_25 = arith.constant dense<0.000000e+00> : vector<16xf32>
    %44 = vector.multi_reduction <add>, %43, %cst_25 [1] : vector<16x32xf32> to vector<16xf32>
    %45 = vector.shape_cast %44 : vector<16xf32> to vector<16x1xf32>
    %46 = vector.shape_cast %45 : vector<16x1xf32> to vector<2x8x1xf32>
    %cst_26 = arith.constant dense<0xFF800000> : vector<2x1xf32>
    %47 = vector.multi_reduction <maximumf>, %46, %cst_26 [1] : vector<2x8x1xf32> to vector<2x1xf32>
    %48 = vector.shape_cast %47 : vector<2x1xf32> to vector<2x1x1xf32>
    %49 = vector.broadcast %48 : vector<2x1x1xf32> to vector<2x8x1xf32>
    %50 = arith.subf %46, %49 : vector<2x8x1xf32>
    %51 = math.exp %50 : vector<2x8x1xf32>
    %52 = vector.broadcast %51 : vector<2x8x1xf32> to vector<2x8x32xf32>
    %53 = arith.mulf %52, %28 : vector<2x8x32xf32>
    %cst_27 = arith.constant dense<0.000000e+00> : vector<2x32xf32>
    %54 = vector.multi_reduction <add>, %53, %cst_27 [1] : vector<2x8x32xf32> to vector<2x32xf32>
    %cst_28 = arith.constant dense<0.000000e+00> : vector<2x1xf32>
    %55 = vector.multi_reduction <add>, %51, %cst_28 [1] : vector<2x8x1xf32> to vector<2x1xf32>
    %56 = tpu.reciprocal %55 {approx = true} : vector<2x1xf32> -> vector<2x1xf32>
    %57 = vector.broadcast %56 : vector<2x1xf32> to vector<2x32xf32>
    %58 = arith.mulf %54, %57 : vector<2x32xf32>
    %c0_29 = arith.constant 0 : index
    %c0_30 = arith.constant 0 : index
    %59 = vector.load %arg10[%c0_29, %c0_30] : memref<32x32xf32, #tpu.memory_space<vmem>>, vector<32x32xf32>
    %cst_31 = arith.constant dense<0.000000e+00> : vector<2x32xf32>
    %60 = tpu.matmul %58, %59, %cst_31 {dimension_numbers = #tpu.dot_dimension_numbers<[1], [0], [0], [1], [0, 0, 1, 1], [], []>} : vector<2x32xf32>, vector<32x32xf32>, vector<2x32xf32> -> vector<2x32xf32>
    %c0_32 = arith.constant 0 : index
    %c0_33 = arith.constant 0 : index
    %61 = vector.load %arg11[%c0_32, %c0_33] : memref<1x32xf32, #tpu.memory_space<vmem>>, vector<1x32xf32>
    %62 = vector.broadcast %61 : vector<1x32xf32> to vector<2x32xf32>
    %63 = arith.addf %60, %62 : vector<2x32xf32>
    %cst_34 = arith.constant 0.000000e+00 : f32
    %64 = vector.broadcast %cst_34 : f32 to vector<2x32xf32>
    %65 = arith.maximumf %63, %64 : vector<2x32xf32>
    %c0_35 = arith.constant 0 : index
    %c0_36 = arith.constant 0 : index
    %66 = vector.load %arg12[%c0_35, %c0_36] : memref<1x32xf32, #tpu.memory_space<vmem>>, vector<1x32xf32>
    %67 = vector.broadcast %66 : vector<1x32xf32> to vector<2x32xf32>
    %68 = arith.mulf %65, %67 : vector<2x32xf32>
    %cst_37 = arith.constant dense<0.000000e+00> : vector<2xf32>
    %69 = vector.multi_reduction <add>, %68, %cst_37 [1] : vector<2x32xf32> to vector<2xf32>
    %70 = vector.shape_cast %69 : vector<2xf32> to vector<2x1xf32>
    %c0_38 = arith.constant 0 : index
    %c0_39 = arith.constant 0 : index
    %71 = vector.load %arg13[%c0_38, %c0_39] : memref<1x1xf32, #tpu.memory_space<vmem>>, vector<1x1xf32>
    %72 = vector.broadcast %71 : vector<1x1xf32> to vector<2x1xf32>
    %73 = arith.addf %70, %72 : vector<2x1xf32>
    %c0_40 = arith.constant 0 : index
    %c0_41 = arith.constant 0 : index
    %74 = vector.load %arg14[%c0_40, %c0_41] : memref<2x1xf32, #tpu.memory_space<vmem>>, vector<2x1xf32>
    tpu.vector_store %arg14[%c0_40, %c0_41], %73 {strides = array<i32>} : memref<2x1xf32, #tpu.memory_space<vmem>>, vector<2x1xf32>,
    return
  }
}

</mosaic_0001>

<bundles_post_ra>
// kernel: tpu_custom_call.1
= control target key start
LH: loop header
LB: loop body
LE: loop exit
PB: predicated region body
PF: predicated region fallthrough
CT: control target
= control target key end

     0   :  { %s1164_s0 = inlined_call_operand.vmem [shape: f32[16,4], index: 0, kind: input, shape index: {}]   ;;  %s1165_s1 = inlined_call_operand.hbm [shape: f32[4,32], index: 1, kind: input, shape index: {}]   ;;  %s1166_s2 = inlined_call_operand.vmem [shape: f32[1,32], index: 2, kind: input, shape index: {}]   ;;  %s1167_s3 = inlined_call_operand.vmem [shape: f32[32,32], index: 3, kind: input, shape index: {}]   ;;  %s1168_s4 = inlined_call_operand.vmem [shape: f32[1,32], index: 4, kind: input, shape index: {}]   ;;  %s1169_s5 = inlined_call_operand.vmem [shape: f32[1,32], index: 5, kind: input, shape index: {}]   ;;  %s1170_s6 = inlined_call_operand.hbm [shape: f32[32,32], index: 6, kind: input, shape index: {}]   ;;  %s1171_s7 = inlined_call_operand.hbm [shape: f32[32,32], index: 7, kind: input, shape index: {}]   ;;  %s1172_s8 = inlined_call_operand.vmem [shape: f32[1,32], index: 8, kind: input, shape index: {}]   ;;  %s1173_s9 = inlined_call_operand.vmem [shape: f32[1,32], index: 9, kind: input, shape index: {}]   ;;  %s1174_s10 = inlined_call_operand.hbm [shape: f32[32,32], index: 10, kind: input, shape index: {}]   ;;  %s1175_s11 = inlined_call_operand.vmem [shape: f32[1,32], index: 11, kind: input, shape index: {}]   ;;  %s1176_s12 = inlined_call_operand.vmem [shape: f32[1,32], index: 12, kind: input, shape index: {}]   ;;  %s1177_s13 = inlined_call_operand.<no memory space> [shape: f32[1,1], index: 13, kind: input, shape index: {}]   ;;  %s1178_s14 = inlined_call_operand.vmem [shape: f32[2,1], index: 14, kind: output, shape index: {}]  }
   0x1   :  { %v19_v0 = vstv %s1177_s13 }
   0x2   :  { %20 = vst [vmem:[#allocation2] sm:$0x1] %v19_v0 }
   0x3   :  { %21 = vsyncpa [#allocation4], 0 }
   0x4   :  { %22 = vsyncpa [#allocation6], 0 }
   0x5   :  { %23 = vsyncpa [#allocation9], 0  ;;  %s953_s15 = smov [#allocation5]   ;;  %s859_s19 = scalar_lea.hbm %s1170_s6, 512 }
   0x6   :  { %s49_s16 = sshll.u32 %s953_s15, 4  ;;  %p860_p0 = scmp.ne.s32.totalorder %s1170_s6, %s859_s19  ;;  %s50_s16 = int_to_ptr.vmem [resolvable:$true] %s49_s16 }
   0x7   :  { %p863_p1 = scmp.lt.u32.totalorder %s859_s19, %s1170_s6 }
   0x9   :  { %p865_p2 = pnand %p863_p1, %p860_p0 }
   0xb   :  { %868 = shalt.err (!%p865_p2)
}
   0xc   :  { %s869_s13 = scalar_lea.vmem %s50_s16, 512  ;;  %p874_p4 = scmp.lt.s32.totalorder %s50_s16, %s50_s16 }
   0xd   :  { %p870_p3 = scmp.ne.s32.totalorder %s50_s16, %s869_s13  ;;  %p875_p5 = scmp.lt.s32.totalorder %s869_s13, %s869_s13 }
   0xf   :  { %p876_p6 = por %p875_p5, %p874_p4 }
  0x11   :  { %p877_p7 = pnand %p876_p6, %p870_p3 }
  0x13   :  { %880 = shalt.err (!%p877_p7)
}
  0x14   :  { %s954_s24 = smov 128   ;;  %s955_s25 = smov 8  }
  0x15   :  { %55 = dma.hbm_to_vmem [thread:$0]  %s1170_s6, 512, %s50_s16, [#allocation6], %s954_s24, %s954_s24, %s955_s25  }
  0x16   :  { %s956_s28 = smov [#allocation3]   ;;  %s957_s30 = smov [#allocation7]  }
  0x17   :  { %s32_s29 = sshll.u32 %s956_s28, 4  ;;  %s61_s15 = sshll.u32 %s957_s30, 4  ;;  %s33_s29 = int_to_ptr.vmem [resolvable:$true] %s32_s29  ;;  %s62_s15 = int_to_ptr.vmem [resolvable:$true] %s61_s15 }
  0x18   :  { %s881_s19 = scalar_lea.hbm %s1165_s1, 64 }
  0x19   :  { %p882_p8 = scmp.ne.s32.totalorder %s1165_s1, %s881_s19  ;;  %p885_p9 = scmp.lt.u32.totalorder %s881_s19, %s1165_s1 }
  0x1b   :  { %p887_p10 = pnand %p885_p9, %p882_p8 }
  0x1d   :  { %890 = shalt.err (!%p887_p10)
}
  0x1e   :  { %s891_s6 = scalar_lea.vmem %s33_s29, 64  ;;  %p896_p12 = scmp.lt.s32.totalorder %s33_s29, %s33_s29 }
  0x1f   :  { %p892_p11 = scmp.ne.s32.totalorder %s33_s29, %s891_s6  ;;  %p897_p13 = scmp.lt.s32.totalorder %s891_s6, %s891_s6 }
  0x21   :  { %p898_p0 = por %p897_p13, %p896_p12 }
  0x23   :  { %p899_p1 = pnand %p898_p0, %p892_p11 }
  0x25   :  { %902 = shalt.err (!%p899_p1)
}
  0x26   :  { %35 = dma.hbm_to_vmem [thread:$0]  %s1165_s1, 64, %s33_s29, [#allocation4]  }
  0x27   :  { %s903_s28 = scalar_lea.hbm %s1171_s7, 512 }
  0x28   :  { %p904_p2 = scmp.ne.s32.totalorder %s1171_s7, %s903_s28  ;;  %p907_p3 = scmp.lt.u32.totalorder %s903_s28, %s1171_s7 }
  0x2a   :  { %p909_p4 = pnand %p907_p3, %p904_p2 }
  0x2c   :  { %912 = shalt.err (!%p909_p4)
}
  0x2d   :  { %s913_s20 = scalar_lea.vmem %s62_s15, 512  ;;  %p918_p6 = scmp.lt.s32.totalorder %s62_s15, %s62_s15 }
  0x2e   :  { %p914_p5 = scmp.ne.s32.totalorder %s62_s15, %s913_s20  ;;  %p919_p7 = scmp.lt.s32.totalorder %s913_s20, %s913_s20 }
  0x30   :  { %p920_p8 = por %p919_p7, %p918_p6 }
  0x32   :  { %p921_p9 = pnand %p920_p8, %p914_p5 }
  0x34   :  { %924 = shalt.err (!%p921_p9)
}
  0x35   :  { %67 = dma.hbm_to_vmem [thread:$0]  %s1171_s7, 512, %s62_s15, [#allocation6], %s954_s24, %s954_s24, %s955_s25  }
  0x36   :  { %s958_s21 = smov [#allocation8]   ;;  %s925_s16 = scalar_lea.hbm %s1174_s10, 512 }
  0x37   :  { %s77_s22 = sshll.u32 %s958_s21, 4  ;;  %p926_p10 = scmp.ne.s32.totalorder %s1174_s10, %s925_s16  ;;  %s78_s22 = int_to_ptr.vmem [resolvable:$true] %s77_s22 }
  0x38   :  { %p929_p11 = scmp.lt.u32.totalorder %s925_s16, %s1174_s10 }
  0x3a   :  { %p931_p12 = pnand %p929_p11, %p926_p10 }
  0x3c   :  { %934 = shalt.err (!%p931_p12)
}
  0x3d   :  { %s935_s30 = scalar_lea.vmem %s78_s22, 512  ;;  %p940_p0 = scmp.lt.s32.totalorder %s78_s22, %s78_s22 }
  0x3e   :  { %p936_p13 = scmp.ne.s32.totalorder %s78_s22, %s935_s30  ;;  %p941_p1 = scmp.lt.s32.totalorder %s935_s30, %s935_s30 }
  0x40   :  { %p942_p2 = por %p941_p1, %p940_p0 }
  0x42   :  { %p943_p3 = pnand %p942_p2, %p936_p13 }
  0x44   :  { %946 = shalt.err (!%p943_p3)
}
  0x45   :  { %83 = dma.hbm_to_vmem [thread:$0]  %s1174_s10, 512, %s78_s22, [#allocation9], %s954_s24, %s954_s24, %s955_s25  }
  0x46   :  { %947 = dma.done.wait [#allocation4], 64  }
  0x47   :  { %948 = vsyncadd [#allocation4], 4294967232 }
  0x48   :  { %949 = dma.done.wait [#allocation6], 1024  }
  0x49   :  { %950 = vsyncadd [#allocation6], 4294966272 }
  0x4a   :  { %951 = dma.done.wait [#allocation9], 512  }
  0x4b   :  { %952 = vsyncadd [#allocation9], 4294966784  ;;  %vm119_vm0 = vcmask 1043456   ;;  %vm112_vm1 = vcmask 31744   ;;  %v104_v1 = vld [vmem:[#allocation3] sm:$0xf] }
  0x4c   :  { %v102_v2 = vld [vmem:[%s1164_s0] sm:$0xff]  ;;  %v103_v3 = vld [vmem:[%s1164_s0 + $0x8] sm:$0xff]  ;;  %745 = vmatprep.subr.msk.mxu0 %vm119_vm0, %v104_v1  ;;  %v200_v7 = vld [vmem:[%s1167_s3 + $0x10] sm:$0xff]  ;;  %vm209_vm2 = vcmask 261120   ;;  %vm960_vm3 = vmmov 0   ;;  %vm597_vm4 = vcmask 1041409  }
  0x4d   :  { %747 = vmatprep.mubr.msk.f32.mxu0 %vm112_vm1, %v102_v2  ;;  %v198_v4 = vld [vmem:[%s1167_s3] sm:$0xff]  ;;  %v199_v5 = vld [vmem:[%s1167_s3 + $0x8] sm:$0xff]  ;;  %746 = vmatpush3.msk.msra.mxu0 %vm119_vm0, %v104_v1  ;;  %v201_v8 = vld [vmem:[%s1167_s3 + $0x18] sm:$0xff]  ;;  %vm680_vm5 = vcmask 254976   ;;  %vm692_vm6 = vcmask 1024  }
  0x4e   :  { %v794_v6 = vpack.c.bf16 %v199_v5, %v198_v4  ;;  %748 = vmatmul.mubr.msk.f32.vlgmr.msra.gmra.mrb[0].mxu0 %vm112_vm1, %v103_v3  ;;  %v798_v9 = vpack.c.bf16 %v201_v8, %v200_v7  ;;  %v701_v10 = vld [vmem:[%s1166_s2] ss:$0 sm:$0xff]  ;;  %v348_v27 = vld [vmem:[#allocation7] sm:$0xff]  ;;  %v349_v28 = vld [vmem:[#allocation7 + $0x8] sm:$0xff] }
  0x4f   :  { %v705_v15 = vld [vmem:[%s1168_s4] ss:$0 sm:$0xff]  ;;  %v350_v29 = vld [vmem:[#allocation7 + $0x10] sm:$0xff]  ;;  %v802_v30 = vpack.c.bf16 %v349_v28, %v348_v27  ;;  %v344_v33 = vld [vmem:[#allocation5] sm:$0xff] }
  0x50   :  { %795 = vmatprep.subr.bf16.mxu1 %v794_v6  ;;  %v708_v20 = vld [vmem:[%s1169_s5] ss:$0 sm:$0xff]  ;;  %v345_v34 = vld [vmem:[#allocation5 + $0x8] sm:$0xff]  ;;  %v346_v8 = vld [vmem:[#allocation5 + $0x10] sm:$0xff] }
  0x51   :  { %797 = vmatpush3.bf16.msra.mxu1 %v794_v6  ;;  %v351_v31 = vld [vmem:[#allocation7 + $0x18] sm:$0xff]  ;;  %803 = vmatprep.subr.bf16.mxu0 %v802_v30  ;;  %v810_v35 = vpack.c.bf16 %v345_v34, %v344_v33  ;;  %v584_v27 = vld [vmem:[#allocation8] sm:$0xff]  ;;  %v585_v28 = vld [vmem:[#allocation8 + $0x8] sm:$0xff]  ;;  %v961_v33 = vmov 0.0  }
  0x52   :  { %799 = vmatprep.subr.bf16.mxu1 %v798_v9  ;;  %v806_v32 = vpack.c.bf16 %v351_v31, %v350_v29  ;;  %805 = vmatpush3.bf16.msra.mxu0 %v802_v30  ;;  %v586_v29 = vld [vmem:[#allocation8 + $0x10] sm:$0xff]  ;;  %v959_v30 = vmov 0.0|0.0   ;;  %v819_v31 = vpack.c.bf16 %v585_v28, %v584_v27  ;;  %v717_v28 = vld [vmem:[%s1176_s12] ss:$0 sm:$0xff] }
  0x54   :  { %807 = vmatprep.subr.bf16.mxu0 %v806_v32 }
  0x55   :  { %801 = vmatpush3.bf16.msra.mxu1 %v798_v9  ;;  %v347_v9 = vld [vmem:[#allocation5 + $0x18] sm:$0xff] }
  0x56   :  { %809 = vmatpush3.bf16.msra.mxu0 %v806_v32  ;;  %818 = vmatprep.subr.bf16.mxu1 %v959_v30  ;;  %v587_v32 = vld [vmem:[#allocation8 + $0x18] sm:$0xff] }
  0x57   :  { %811 = vmatprep.subr.bf16.mxu0 %v810_v35  ;;  %v822_v34 = vpack.c.bf16 %v587_v32, %v586_v29  ;;  %v718_v32 = vld [vmem:[#allocation2] ss:$0 sm:$0xff] }
 0x121   :  { %v749_v11 = vpop.f32.mrb[0].mxu0 }
 0x122   :  { %v189_v12 = vpop.f32.mrb[1].mxu0  ;;  %v1120_v14 = vadd.f32 %v749_v11, %v701_v10 }
 0x123   :  { %v1118_v13 = vadd.f32 %v701_v10, %v189_v12  ;;  %v814_v12 = vpack.c.bf16 %v347_v9, %v346_v8 }
 0x125   :  { %758 = vmatprep.mubr.msk.f32.mxu1 %vm209_vm2, %v1118_v13 }
 0x126   :  { %759 = vmatmul.mubr.msk.f32.vlgmr.msra.gmra.mrb[0].mxu1 %vm209_vm2, %v1120_v14 }
 0x127   :  { %791 = vmatprep.mubr.msk.f32.mxu1 %vm960_vm3, %v961_v33  ;;  %820 = vmatpush3.bf16.msra.mxu1 %v819_v31 }
 0x128   :  { %821 = vmatprep.subr.bf16.mxu1 %v959_v30 }
 0x12b   :  { %823 = vmatpush3.bf16.msra.mxu1 %v822_v34 }
 0x1f9   :  { %v760_v16 = vpop.f32.mrb[0].mxu1 }
 0x1fa   :  { %v288_v17 = vadd.f32 %v760_v16, %v705_v15  ;;  %v282_v18 = vpop.f32.mrb[1].mxu1 }
 0x1fb   :  { %v283_v19 = vadd.f32 %v705_v15, %v282_v18  ;;  %v713_v15 = vld [vmem:[%s1172_s8] ss:$0 sm:$0xff] }
 0x1fc   :  { %835 = vtanh.f32 %v288_v17 }
 0x1fd   :  { %837 = vtanh.f32 %v283_v19 }
 0x206   :  { %v836_v21 = vpop.eup %835 }
 0x207   :  { %v838_v22 = vpop.eup %837  ;;  %v301_v25 = vmul.f32 %v836_v21, %v708_v20 }
 0x208   :  { %v300_v23 = vmul.f32 %v838_v22, %v708_v20  ;;  %v714_v20 = vld [vmem:[%s1173_s9] ss:$0 sm:$0xff] }
 0x209   :  { %v305_v26 = vsel %vm209_vm2, %v301_v25, 0.0 }
 0x20a   :  { %v302_v24 = vsel %vm209_vm2, %v300_v23, 0.0 }
 0x20b   :  { %303 = vadd.xlane.f32.xlu0 %v302_v24 }
 0x20f   :  { %306 = vadd.xlane.f32.xlu0 %v305_v26 }
 0x298   :  { %v304_v36 = vpop.xlane.xlu0 %303 }
 0x299   :  { %v308_v37 = vrot.slane %v304_v36, 4 }
 0x29b   :  { %v309_v38 = vmax.f32 %v304_v36, %v308_v37 }
 0x29c   :  { %v307_v39 = vpop.xlane.xlu0 %306 }
 0x29d   :  { %v310_v40 = vrot.slane %v309_v38, 2  ;;  %v314_v41 = vrot.slane %v307_v39, 4 }
 0x29f   :  { %v311_v42 = vmax.f32 %v309_v38, %v310_v40  ;;  %v315_v43 = vmax.f32 %v307_v39, %v314_v41 }
 0x2a1   :  { %v312_v44 = vrot.slane %v311_v42, 1  ;;  %v316_v45 = vrot.slane %v315_v43, 2 }
 0x2a3   :  { %v313_v46 = vmax.f32 %v311_v42, %v312_v44  ;;  %v317_v47 = vmax.f32 %v315_v43, %v316_v45 }
 0x2a5   :  { %v320_v48 = vsub.f32 %v304_v36, %v313_v46  ;;  %v318_v49 = vrot.slane %v317_v47, 1 }
 0x2a7   :  { %v322_v50 = vmul.f32 1.442695, %v320_v48  ;;  %v319_v51 = vmax.f32 %v317_v47, %v318_v49 }
 0x2a9   :  { %839 = vpow2.f32 %v322_v50  ;;  %v321_v52 = vsub.f32 %v307_v39, %v319_v51 }
 0x2ab   :  { %v324_v53 = vmul.f32 1.442695, %v321_v52 }
 0x2ad   :  { %841 = vpow2.f32 %v324_v53 }
 0x2b3   :  { %v840_v54 = vpop.eup %839 }
 0x2b4   :  { %v326_v55 = vrot.slane %v840_v54, 4 }
 0x2b6   :  { %v327_v56 = vadd.f32 %v840_v54, %v326_v55 }
 0x2b7   :  { %v842_v57 = vpop.eup %841 }
 0x2b8   :  { %v332_v58 = vrot.slane %v842_v57, 4  ;;  %v328_v59 = vrot.slane %v327_v56, 2 }
 0x2ba   :  { %v333_v60 = vadd.f32 %v842_v57, %v332_v58  ;;  %v329_v61 = vadd.f32 %v328_v59, %v327_v56 }
 0x2bc   :  { %v330_v62 = vrot.slane %v329_v61, 1  ;;  %v334_v63 = vrot.slane %v333_v60, 2 }
 0x2be   :  { %v331_v0 = vadd.f32 %v330_v62, %v329_v61  ;;  %v335_v1 = vadd.f32 %v334_v63, %v333_v60 }
 0x2c0   :  { %843 = vrcp.f32 %v331_v0  ;;  %v336_v2 = vrot.slane %v335_v1, 1 }
 0x2c2   :  { %v337_v3 = vadd.f32 %v336_v2, %v335_v1 }
 0x2c4   :  { %845 = vrcp.f32 %v337_v3 }
 0x2ca   :  { %v844_v4 = vpop.eup %843 }
 0x2cb   :  { %v340_v5 = vmul.f32 %v844_v4, %v840_v54 }
 0x2cd   :  { %v342_v6 = vmul.f32 %v340_v5, %v1118_v13 }
 0x2ce   :  { %v846_v7 = vpop.eup %845 }
 0x2cf   :  { %769 = vmatprep.mubr.msk.f32.mxu0 %vm209_vm2, %v342_v6  ;;  %v341_v10 = vmul.f32 %v846_v7, %v842_v57 }
 0x2d1   :  { %v343_v11 = vmul.f32 %v341_v10, %v1120_v14 }
 0x2d3   :  { %770 = vmatmul.mubr.msk.f32.vlgmr.msra.gmra.mrb[2].mxu0 %vm209_vm2, %v343_v11 }
 0x2d4   :  { %813 = vmatpush3.bf16.msra.mxu0 %v810_v35  ;;  %780 = vmatprep.mubr.msk.f32.mxu0 %vm209_vm2, %v1118_v13 }
 0x2d5   :  { %815 = vmatprep.subr.bf16.mxu0 %v814_v12 }
 0x2d8   :  { %817 = vmatpush3.bf16.msra.mxu0 %v814_v12 }
 0x2db   :  { %781 = vmatmul.mubr.msk.f32.vlgmr.msra.gmra.mrb[2].mxu0 %vm209_vm2, %v1120_v14 }
 0x3ae   :  { %v782_v16 = vpop.f32.mrb[2].mxu0 }
 0x3af   :  { %v516_v17 = vadd.f32 %v782_v16, %v713_v15  ;;  %v499_v18 = vpop.f32.mrb[3].mxu0 }
 0x3b0   :  { %v515_v19 = vadd.f32 %v713_v15, %v499_v18 }
 0x3b1   :  { %847 = vtanh.f32 %v516_v17 }
 0x3b2   :  { %849 = vtanh.f32 %v515_v19 }
 0x3bb   :  { %v848_v21 = vpop.eup %847 }
 0x3bc   :  { %v850_v22 = vpop.eup %849  ;;  %v527_v25 = vmul.f32 %v848_v21, %v714_v20 }
 0x3bd   :  { %v526_v23 = vmul.f32 %v850_v22, %v714_v20 }
 0x3be   :  { %v531_v26 = vsel %vm209_vm2, %v527_v25, 0.0 }
 0x3bf   :  { %v528_v24 = vsel %vm209_vm2, %v526_v23, 0.0 }
 0x3c0   :  { %529 = vadd.xlane.f32.xlu1 %v528_v24  ;;  %v715_v24 = vld [vmem:[%s1175_s11] ss:$0 sm:$0xff] }
 0x3c4   :  { %532 = vadd.xlane.f32.xlu1 %v531_v26 }
 0x44d   :  { %v530_v35 = vpop.xlane.xlu1 %529 }
 0x44e   :  { %v534_v36 = vrot.slane %v530_v35, 4 }
 0x450   :  { %v535_v37 = vmax.f32 %v530_v35, %v534_v36 }
 0x451   :  { %v533_v38 = vpop.xlane.xlu1 %532 }
 0x452   :  { %v536_v39 = vrot.slane %v535_v37, 2  ;;  %v540_v40 = vrot.slane %v533_v38, 4 }
 0x454   :  { %v537_v41 = vmax.f32 %v535_v37, %v536_v39  ;;  %v541_v42 = vmax.f32 %v533_v38, %v540_v40 }
 0x456   :  { %v538_v43 = vrot.slane %v537_v41, 1  ;;  %v542_v44 = vrot.slane %v541_v42, 2 }
 0x458   :  { %v539_v45 = vmax.f32 %v537_v41, %v538_v43  ;;  %v543_v46 = vmax.f32 %v541_v42, %v542_v44 }
 0x45a   :  { %v546_v47 = vsub.f32 %v530_v35, %v539_v45  ;;  %v544_v48 = vrot.slane %v543_v46, 1 }
 0x45c   :  { %v548_v49 = vmul.f32 1.442695, %v546_v47  ;;  %v545_v50 = vmax.f32 %v543_v46, %v544_v48 }
 0x45e   :  { %851 = vpow2.f32 %v548_v49  ;;  %v547_v51 = vsub.f32 %v533_v38, %v545_v50 }
 0x460   :  { %v550_v52 = vmul.f32 1.442695, %v547_v51 }
 0x462   :  { %853 = vpow2.f32 %v550_v52 }
 0x468   :  { %v852_v53 = vpop.eup %851 }
 0x469   :  { %v552_v54 = vmul.f32 %v852_v53, %v1118_v13  ;;  %v568_v55 = vrot.slane %v852_v53, 4 }
 0x46b   :  { %v554_v56 = vsel %vm209_vm2, %v552_v54, 0.0  ;;  %v569_v57 = vadd.f32 %v852_v53, %v568_v55 }
 0x46c   :  { %v854_v58 = vpop.eup %853  ;;  %v555_v62 = vrot.slane %v554_v56, 4 }
 0x46d   :  { %v574_v59 = vrot.slane %v854_v58, 4  ;;  %v553_v60 = vmul.f32 %v854_v58, %v1120_v14  ;;  %v570_v61 = vrot.slane %v569_v57, 2 }
 0x46e   :  { %v556_v5 = vadd.f32 %v555_v62, %v554_v56 }
 0x46f   :  { %v561_v63 = vsel %vm209_vm2, %v553_v60, 0.0  ;;  %v571_v0 = vadd.f32 %v570_v61, %v569_v57  ;;  %v575_v1 = vadd.f32 %v854_v58, %v574_v59 }
 0x470   :  { %v562_v2 = vrot.slane %v561_v63, 4  ;;  %v557_v9 = vrot.slane %v556_v5, 2 }
 0x471   :  { %v572_v3 = vrot.slane %v571_v0, 1  ;;  %v576_v4 = vrot.slane %v575_v1, 2 }
 0x472   :  { %v563_v6 = vadd.f32 %v562_v2, %v561_v63  ;;  %v558_v14 = vadd.f32 %v557_v9, %v556_v5 }
 0x473   :  { %v573_v13 = vadd.f32 %v572_v3, %v571_v0  ;;  %v577_v7 = vadd.f32 %v576_v4, %v575_v1 }
 0x474   :  { %v564_v10 = vrot.slane %v563_v6, 2  ;;  %v559_v15 = vrot.slane %v558_v14, 1 }
 0x475   :  { %v578_v8 = vrot.slane %v577_v7, 1  ;;  %855 = vrcp.f32 %v573_v13 }
 0x476   :  { %v565_v12 = vadd.f32 %v564_v10, %v563_v6  ;;  %v560_v18 = vadd.f32 %v559_v15, %v558_v14 }
 0x477   :  { %v579_v11 = vadd.f32 %v578_v8, %v577_v7 }
 0x478   :  { %v566_v16 = vrot.slane %v565_v12, 1 }
 0x479   :  { %857 = vrcp.f32 %v579_v11 }
 0x47a   :  { %v567_v19 = vadd.f32 %v566_v16, %v565_v12 }
 0x47f   :  { %v856_v17 = vpop.eup %855 }
 0x480   :  { %v582_v21 = vmul.f32 %v856_v17, %v560_v18 }
 0x483   :  { %v858_v20 = vpop.eup %857 }
 0x484   :  { %v583_v22 = vmul.f32 %v858_v20, %v567_v19 }
 0x486   :  { %v598_v23 = vsel %vm597_vm4, %v583_v22, %v582_v21 }
 0x487   :  { %792 = vmatmul.mubr.msk.f32.vlgmr.msra.gmra.mrb[2].mxu1 %vm209_vm2, %v598_v23 }
 0x55a   :  { %v667_v25 = vpop.f32.mrb[2].mxu1 }
 0x55b   :  { %v668_v26 = vadd.f32 %v715_v24, %v667_v25  ;;  %v793_v27 = vpop.f32.mrb[3].mxu1 }
 0x55d   :  { %v671_v29 = vmax.f32 %v668_v26, 0.0 }
 0x55f   :  { %v679_v30 = vmul.f32 %v717_v28, %v671_v29 }
 0x561   :  { %v681_v31 = vsel %vm680_vm5, %v679_v30, 0.0 }
 0x562   :  { %682 = vadd.xlane.f32.xlu0 %v681_v31 }
 0x5ef   :  { %v683_v33 = vpop.xlane.xlu0 %682 }
 0x5f0   :  { %v691_v34 = vadd.f32 %v718_v32, %v683_v33 }
 0x5f2   :  { %693 = vst.msk [vmem:[%s1178_s14] sm:$0x3] %vm692_vm6, %v691_v34 }
 0x5f3   :  { %698 = vsyncpa [#allocation4], 1 }
 0x5f4   :  { %699 = vsyncpa [#allocation6], 1 }
 0x5f5   :  { %700 = vsyncpa [#allocation9], 1 }

</bundles_post_ra>
